<compile_context>
chip_gen: v5e
topology: v5e:2x2
jax: 0.10.0
libtpu: 0.0.40
codegen_flags: <defaults>
</compile_context>

<pallas_src>
import functools

import jax
import jax.numpy as jnp
from jax import lax
from jax.experimental import pallas as pl
from jax.experimental.pallas import tpu as pltpu


def _bn_stats_kernel(x_ref, gamma_ref, beta_ref,
                     scale_ref, shift_ref, mean_ref, var_ref,
                     sum_sc, sumsq_sc, *, eps, inv_count):
    """Grid: (C_blocks, L_blocks). x block: (N, Cb, TL). Outputs: (Cb, 1)."""
    l = pl.program_id(1)

    @pl.when(l == 0)
    def _init():
        sum_sc[...] = jnp.zeros_like(sum_sc)
        sumsq_sc[...] = jnp.zeros_like(sumsq_sc)

    x = x_ref[...].astype(jnp.float32)                 # (N, Cb, TL)
    # VPU adds across the batch axis first, then one cross-lane reduce/block.
    xs = jnp.sum(x, axis=0)                            # (Cb, TL)
    xsq = jnp.sum(x * x, axis=0)                       # (Cb, TL)
    sum_sc[...] += jnp.sum(xs, axis=-1, keepdims=True)      # (Cb, 1)
    sumsq_sc[...] += jnp.sum(xsq, axis=-1, keepdims=True)   # (Cb, 1)

    @pl.when(l == pl.num_programs(1) - 1)
    def _finalize():
        mean = sum_sc[...] * inv_count
        var = sumsq_sc[...] * inv_count - mean * mean        # biased variance
        inv_std = lax.rsqrt(var + eps)
        g = gamma_ref[...].astype(jnp.float32)
        b = beta_ref[...].astype(jnp.float32)
        scale = g * inv_std
        mean_ref[...] = mean
        var_ref[...] = var
        scale_ref[...] = scale
        shift_ref[...] = b - mean * scale


def _bn_norm_kernel(x_ref, scale_ref, shift_ref, o_ref):
    """Grid: (C_blocks, L_blocks). y = x * scale + shift (folded affine)."""
    x = x_ref[...].astype(jnp.float32)                 # (N, Cb, TL)
    scale = scale_ref[...][None, :, :]                 # (1, Cb, 1)
    shift = shift_ref[...][None, :, :]
    o_ref[...] = (x * scale + shift).astype(o_ref.dtype)


def _pick_channel_block(C):
    """Channel block: full C if not 8-divisible, else a multiple of 8 dividing C."""
    if C % 8 != 0:
        return C
    for cand in (64, 32, 16, 8):
        if C % cand == 0:
            return cand
    return 8


def _pick_len_block(L, max_bytes, row_bytes):
    """Largest multiple of 128 dividing L with a block under max_bytes, else L."""
    max_tl = max(128, max_bytes // max(row_bytes, 1))
    best = None
    d = 128
    while d <= L and d <= max_tl:
        if L % d == 0:
            best = d
        d += 128
    return best if best is not None else L


def meta_batch_norm_2d(x, weight, bias, running_mean=None, running_var=None,
                       momentum=0.1, eps=1e-5):
    """Training-mode BatchNorm2d forward on NCHW input.

    Returns y if running stats are not provided, otherwise
    (y, new_running_mean, new_running_var) with the PyTorch EMA update
    (unbiased variance), matching F.batch_norm(training=True) semantics.
    """
    N, C, H, W = x.shape
    L = H * W
    x3 = x.reshape(N, C, L)                 # free reshape, no transpose
    gamma = weight.reshape(C, 1)
    beta = bias.reshape(C, 1)

    cb = _pick_channel_block(C)
    itemsize = jnp.dtype(x.dtype).itemsize
    tl = _pick_len_block(L, max_bytes=2 * 1024 * 1024,
                         row_bytes=N * cb * itemsize)
    nc = C // cb
    nl = L // tl
    inv_count = 1.0 / float(N * L)

    stats_kernel = functools.partial(
        _bn_stats_kernel, eps=float(eps), inv_count=inv_count)

    scale, shift, mean, var = pl.pallas_call(
        stats_kernel,
        out_shape=(
            jax.ShapeDtypeStruct((C, 1), jnp.float32),
            jax.ShapeDtypeStruct((C, 1), jnp.float32),
            jax.ShapeDtypeStruct((C, 1), jnp.float32),
            jax.ShapeDtypeStruct((C, 1), jnp.float32),
        ),
        grid_spec=pltpu.PrefetchScalarGridSpec(
            num_scalar_prefetch=0,
            grid=(nc, nl),
            in_specs=[
                pl.BlockSpec((N, cb, tl), lambda c, l: (0, c, l)),
                pl.BlockSpec((cb, 1), lambda c, l: (c, 0)),
                pl.BlockSpec((cb, 1), lambda c, l: (c, 0)),
            ],
            out_specs=[
                pl.BlockSpec((cb, 1), lambda c, l: (c, 0)),
                pl.BlockSpec((cb, 1), lambda c, l: (c, 0)),
                pl.BlockSpec((cb, 1), lambda c, l: (c, 0)),
                pl.BlockSpec((cb, 1), lambda c, l: (c, 0)),
            ],
            scratch_shapes=[
                pltpu.VMEM((cb, 1), jnp.float32),
                pltpu.VMEM((cb, 1), jnp.float32),
            ],
        ),
        compiler_params=pltpu.CompilerParams(
            dimension_semantics=("parallel", "arbitrary")),
    )(x3, gamma, beta)

    y3 = pl.pallas_call(
        _bn_norm_kernel,
        out_shape=jax.ShapeDtypeStruct((N, C, L), x.dtype),
        grid_spec=pltpu.PrefetchScalarGridSpec(
            num_scalar_prefetch=0,
            grid=(nc, nl),
            in_specs=[
                pl.BlockSpec((N, cb, tl), lambda c, l: (0, c, l)),
                pl.BlockSpec((cb, 1), lambda c, l: (c, 0)),
                pl.BlockSpec((cb, 1), lambda c, l: (c, 0)),
            ],
            out_specs=pl.BlockSpec((N, cb, tl), lambda c, l: (0, c, l)),
        ),
        compiler_params=pltpu.CompilerParams(
            dimension_semantics=("parallel", "parallel")),
    )(x3, scale, shift)

    y = y3.reshape(N, C, H, W)

    if running_mean is None or running_var is None:
        return y

    # PyTorch F.batch_norm(training=True) buffer update: EMA with *unbiased* var.
    count = float(N * L)
    unbiased = count / max(count - 1.0, 1.0)
    mean1 = mean.reshape(C).astype(running_mean.dtype)
    var1 = (var.reshape(C) * unbiased).astype(running_var.dtype)
    new_rm = (1.0 - momentum) * running_mean + momentum * mean1
    new_rv = (1.0 - momentum) * running_var + momentum * var1
    # TODO(synk): num_batches_tracked increment (a Python-side long buffer) is
    # not modeled here; momentum is taken as a given scalar.
    return y, new_rm, new_rv


if __name__ == "__main__":
    key = jax.random.PRNGKey(0)
    kx, kw, kb = jax.random.split(key, 3)

    N, C, H, W = 2, 4, 16, 16
    momentum, eps = 0.1, 1e-5
    x = jax.random.normal(kx, (N, C, H, W), dtype=jnp.float32)
    weight = jax.random.uniform(kw, (C,), dtype=jnp.float32, minval=0.5, maxval=1.5)
    bias = jax.random.uniform(kb, (C,), dtype=jnp.float32, minval=-0.5, maxval=0.5)
    running_mean = jnp.zeros((C,), jnp.float32)
    running_var = jnp.ones((C,), jnp.float32)

    y, new_rm, new_rv = meta_batch_norm_2d(
        x, weight, bias, running_mean, running_var, momentum=momentum, eps=eps)
    y = jax.block_until_ready(y)

    # Pure-JAX reference (training-mode batch norm + PyTorch buffer update).
    mean_ref = jnp.mean(x, axis=(0, 2, 3))
    var_ref = jnp.mean((x - mean_ref.reshape(1, C, 1, 1)) ** 2, axis=(0, 2, 3))
    y_ref = ((x - mean_ref.reshape(1, C, 1, 1))
             / jnp.sqrt(var_ref.reshape(1, C, 1, 1) + eps)
             * weight.reshape(1, C, 1, 1) + bias.reshape(1, C, 1, 1))
    n_elem = N * H * W
    rm_ref = (1 - momentum) * running_mean + momentum * mean_ref
    rv_ref = (1 - momentum) * running_var + momentum * (var_ref * n_elem / (n_elem - 1))

    assert y.shape == (N, C, H, W)
    assert jnp.allclose(y, y_ref, atol=1e-5, rtol=1e-5)
    assert jnp.allclose(new_rm, rm_ref, atol=1e-6, rtol=1e-6)
    assert jnp.allclose(new_rv, rv_ref, atol=1e-5, rtol=1e-5)

    print("KERNEL_OK")
</pallas_src>

<mosaic_0001>
module attributes {stable_mosaic.version = 11 : i64} {
  func.func @_bn_stats_kernel(%arg0: i32, %arg1: i32, %arg2: memref<2x4x256xf32, #tpu.memory_space<vmem>>, %arg3: memref<4x1xf32, #tpu.memory_space<vmem>>, %arg4: memref<4x1xf32, #tpu.memory_space<vmem>>, %arg5: memref<4x1xf32, #tpu.memory_space<vmem>>, %arg6: memref<4x1xf32, #tpu.memory_space<vmem>>, %arg7: memref<4x1xf32, #tpu.memory_space<vmem>>, %arg8: memref<4x1xf32, #tpu.memory_space<vmem>>, %arg9: memref<4x1xf32, #tpu.memory_space<vmem>>, %arg10: memref<4x1xf32, #tpu.memory_space<vmem>>) attributes {dimension_semantics = [#tpu.dimension_semantics<parallel>, #tpu.dimension_semantics<arbitrary>], iteration_bounds = array<i64: 1, 1>, scalar_prefetch = 0 : i64, scratch_operands = 2 : i64, tpu.core_type = #tpu.core_type<tc>, window_params = [{transform_indices = @transform_0, window_bounds = array<i64: 2, 4, 256>}, {transform_indices = @transform_1, window_bounds = array<i64: 4, 1>}, {transform_indices = @transform_2, window_bounds = array<i64: 4, 1>}, {transform_indices = @transform_3, window_bounds = array<i64: 4, 1>}, {transform_indices = @transform_4, window_bounds = array<i64: 4, 1>}, {transform_indices = @transform_5, window_bounds = array<i64: 4, 1>}, {transform_indices = @transform_6, window_bounds = array<i64: 4, 1>}]} {
    %c0_i32 = arith.constant 0 : i32
    %0 = arith.cmpi eq, %arg1, %c0_i32 : i32
    %1 = arith.extui %0 : i1 to i32
    %c0_i32_0 = arith.constant 0 : i32
    %2 = arith.cmpi ne, %1, %c0_i32_0 : i32
    scf.if %2 {
      %cst_16 = arith.constant 0.000000e+00 : f32
      %20 = vector.broadcast %cst_16 : f32 to vector<4x1xf32>
      %c0_17 = arith.constant 0 : index
      %c0_18 = arith.constant 0 : index
      %21 = vector.load %arg9[%c0_17, %c0_18] : memref<4x1xf32, #tpu.memory_space<vmem>>, vector<4x1xf32>
      tpu.vector_store %arg9[%c0_17, %c0_18], %20 {strides = array<i32>} : memref<4x1xf32, #tpu.memory_space<vmem>>, vector<4x1xf32>,
      %cst_19 = arith.constant 0.000000e+00 : f32
      %22 = vector.broadcast %cst_19 : f32 to vector<4x1xf32>
      %c0_20 = arith.constant 0 : index
      %c0_21 = arith.constant 0 : index
      %23 = vector.load %arg10[%c0_20, %c0_21] : memref<4x1xf32, #tpu.memory_space<vmem>>, vector<4x1xf32>
      tpu.vector_store %arg10[%c0_20, %c0_21], %22 {strides = array<i32>} : memref<4x1xf32, #tpu.memory_space<vmem>>, vector<4x1xf32>,
    } else {
    }
    %c0 = arith.constant 0 : index
    %c0_1 = arith.constant 0 : index
    %c0_2 = arith.constant 0 : index
    %3 = vector.load %arg2[%c0, %c0_1, %c0_2] : memref<2x4x256xf32, #tpu.memory_space<vmem>>, vector<2x4x256xf32>
    %cst = arith.constant dense<0.000000e+00> : vector<4x256xf32>
    %4 = vector.multi_reduction <add>, %3, %cst [0] : vector<2x4x256xf32> to vector<4x256xf32>
    %5 = arith.mulf %3, %3 : vector<2x4x256xf32>
    %cst_3 = arith.constant dense<0.000000e+00> : vector<4x256xf32>
    %6 = vector.multi_reduction <add>, %5, %cst_3 [0] : vector<2x4x256xf32> to vector<4x256xf32>
    %c0_4 = arith.constant 0 : index
    %c0_5 = arith.constant 0 : index
    %7 = vector.load %arg9[%c0_4, %c0_5] : memref<4x1xf32, #tpu.memory_space<vmem>>, vector<4x1xf32>
    %cst_6 = arith.constant dense<0.000000e+00> : vector<4xf32>
    %8 = vector.multi_reduction <add>, %4, %cst_6 [1] : vector<4x256xf32> to vector<4xf32>
    %9 = vector.shape_cast %8 : vector<4xf32> to vector<4x1xf32>
    %10 = arith.addf %7, %9 : vector<4x1xf32>
    %c0_7 = arith.constant 0 : index
    %c0_8 = arith.constant 0 : index
    %11 = vector.load %arg9[%c0_7, %c0_8] : memref<4x1xf32, #tpu.memory_space<vmem>>, vector<4x1xf32>
    tpu.vector_store %arg9[%c0_7, %c0_8], %10 {strides = array<i32>} : memref<4x1xf32, #tpu.memory_space<vmem>>, vector<4x1xf32>,
    %c0_9 = arith.constant 0 : index
    %c0_10 = arith.constant 0 : index
    %12 = vector.load %arg10[%c0_9, %c0_10] : memref<4x1xf32, #tpu.memory_space<vmem>>, vector<4x1xf32>
    %cst_11 = arith.constant dense<0.000000e+00> : vector<4xf32>
    %13 = vector.multi_reduction <add>, %6, %cst_11 [1] : vector<4x256xf32> to vector<4xf32>
    %14 = vector.shape_cast %13 : vector<4xf32> to vector<4x1xf32>
    %15 = arith.addf %12, %14 : vector<4x1xf32>
    %c0_12 = arith.constant 0 : index
    %c0_13 = arith.constant 0 : index
    %16 = vector.load %arg10[%c0_12, %c0_13] : memref<4x1xf32, #tpu.memory_space<vmem>>, vector<4x1xf32>
    tpu.vector_store %arg10[%c0_12, %c0_13], %15 {strides = array<i32>} : memref<4x1xf32, #tpu.memory_space<vmem>>, vector<4x1xf32>,
    %c0_i32_14 = arith.constant 0 : i32
    %17 = arith.cmpi eq, %arg1, %c0_i32_14 : i32
    %18 = arith.extui %17 : i1 to i32
    %c0_i32_15 = arith.constant 0 : i32
    %19 = arith.cmpi ne, %18, %c0_i32_15 : i32
    scf.if %19 {
      %c0_16 = arith.constant 0 : index
      %c0_17 = arith.constant 0 : index
      %20 = vector.load %arg9[%c0_16, %c0_17] : memref<4x1xf32, #tpu.memory_space<vmem>>, vector<4x1xf32>
      %cst_18 = arith.constant 0.001953125 : f32
      %21 = vector.broadcast %cst_18 : f32 to vector<4x1xf32>
      %22 = arith.mulf %20, %21 : vector<4x1xf32>
      %c0_19 = arith.constant 0 : index
      %c0_20 = arith.constant 0 : index
      %23 = vector.load %arg10[%c0_19, %c0_20] : memref<4x1xf32, #tpu.memory_space<vmem>>, vector<4x1xf32>
      %cst_21 = arith.constant 0.001953125 : f32
      %24 = vector.broadcast %cst_21 : f32 to vector<4x1xf32>
      %25 = arith.mulf %23, %24 : vector<4x1xf32>
      %26 = arith.mulf %22, %22 : vector<4x1xf32>
      %27 = arith.subf %25, %26 : vector<4x1xf32>
      %cst_22 = arith.constant 9.99999974E-6 : f32
      %28 = vector.broadcast %cst_22 : f32 to vector<4x1xf32>
      %29 = arith.addf %27, %28 : vector<4x1xf32>
      %30 = math.rsqrt %29 : vector<4x1xf32>
      %c0_23 = arith.constant 0 : index
      %c0_24 = arith.constant 0 : index
      %31 = vector.load %arg3[%c0_23, %c0_24] : memref<4x1xf32, #tpu.memory_space<vmem>>, vector<4x1xf32>
      %c0_25 = arith.constant 0 : index
      %c0_26 = arith.constant 0 : index
      %32 = vector.load %arg4[%c0_25, %c0_26] : memref<4x1xf32, #tpu.memory_space<vmem>>, vector<4x1xf32>
      %33 = arith.mulf %31, %30 : vector<4x1xf32>
      %c0_27 = arith.constant 0 : index
      %c0_28 = arith.constant 0 : index
      %34 = vector.load %arg7[%c0_27, %c0_28] : memref<4x1xf32, #tpu.memory_space<vmem>>, vector<4x1xf32>
      tpu.vector_store %arg7[%c0_27, %c0_28], %22 {strides = array<i32>} : memref<4x1xf32, #tpu.memory_space<vmem>>, vector<4x1xf32>,
      %c0_29 = arith.constant 0 : index
      %c0_30 = arith.constant 0 : index
      %35 = vector.load %arg8[%c0_29, %c0_30] : memref<4x1xf32, #tpu.memory_space<vmem>>, vector<4x1xf32>
      tpu.vector_store %arg8[%c0_29, %c0_30], %27 {strides = array<i32>} : memref<4x1xf32, #tpu.memory_space<vmem>>, vector<4x1xf32>,
      %c0_31 = arith.constant 0 : index
      %c0_32 = arith.constant 0 : index
      %36 = vector.load %arg5[%c0_31, %c0_32] : memref<4x1xf32, #tpu.memory_space<vmem>>, vector<4x1xf32>
      tpu.vector_store %arg5[%c0_31, %c0_32], %33 {strides = array<i32>} : memref<4x1xf32, #tpu.memory_space<vmem>>, vector<4x1xf32>,
      %37 = arith.mulf %22, %33 : vector<4x1xf32>
      %38 = arith.subf %32, %37 : vector<4x1xf32>
      %c0_33 = arith.constant 0 : index
      %c0_34 = arith.constant 0 : index
      %39 = vector.load %arg6[%c0_33, %c0_34] : memref<4x1xf32, #tpu.memory_space<vmem>>, vector<4x1xf32>
      tpu.vector_store %arg6[%c0_33, %c0_34], %38 {strides = array<i32>} : memref<4x1xf32, #tpu.memory_space<vmem>>, vector<4x1xf32>,
    } else {
    }
    return
  }
  func.func @transform_0(%arg0: i32, %arg1: i32) -> (i32, i32, i32) {
    %c0_i32 = arith.constant 0 : i32
    %c0_i32_0 = arith.constant 0 : i32
    return %c0_i32, %arg0, %arg1 : i32, i32, i32
  }
  func.func @transform_1(%arg0: i32, %arg1: i32) -> (i32, i32) {
    %c0_i32 = arith.constant 0 : i32
    %c0_i32_0 = arith.constant 0 : i32
    return %arg0, %c0_i32 : i32, i32
  }
  func.func @transform_2(%arg0: i32, %arg1: i32) -> (i32, i32) {
    %c0_i32 = arith.constant 0 : i32
    %c0_i32_0 = arith.constant 0 : i32
    return %arg0, %c0_i32 : i32, i32
  }
  func.func @transform_3(%arg0: i32, %arg1: i32) -> (i32, i32) {
    %c0_i32 = arith.constant 0 : i32
    %c0_i32_0 = arith.constant 0 : i32
    return %arg0, %c0_i32 : i32, i32
  }
  func.func @transform_4(%arg0: i32, %arg1: i32) -> (i32, i32) {
    %c0_i32 = arith.constant 0 : i32
    %c0_i32_0 = arith.constant 0 : i32
    return %arg0, %c0_i32 : i32, i32
  }
  func.func @transform_5(%arg0: i32, %arg1: i32) -> (i32, i32) {
    %c0_i32 = arith.constant 0 : i32
    %c0_i32_0 = arith.constant 0 : i32
    return %arg0, %c0_i32 : i32, i32
  }
  func.func @transform_6(%arg0: i32, %arg1: i32) -> (i32, i32) {
    %c0_i32 = arith.constant 0 : i32
    %c0_i32_0 = arith.constant 0 : i32
    return %arg0, %c0_i32 : i32, i32
  }
}

</mosaic_0001>

<bundles_post_ra>
// kernel: tpu_custom_call.1
= control target key start
LH: loop header
LB: loop body
LE: loop exit
PB: predicated region body
PF: predicated region fallthrough
CT: control target
= control target key end

     0   :  { %12 = vsyncpa [#allocation5], 0  ;;  %s179_s24 = smov [#allocation4]   ;;  %s180_s26 = smov 128   ;;  %s259_s0 = inlined_call_operand.hbm [shape: f32[2,4,256], index: 0, kind: input, shape index: {}]   ;;  %s260_s1 = inlined_call_operand.vmem [shape: f32[4,1], index: 1, kind: input, shape index: {}]   ;;  %s261_s2 = inlined_call_operand.vmem [shape: f32[4,1], index: 2, kind: input, shape index: {}]   ;;  %s262_s3 = inlined_call_operand.vmem [shape: f32[4,1], index: 3, kind: output, shape index: {0}]   ;;  %s263_s4 = inlined_call_operand.vmem [shape: f32[4,1], index: 4, kind: output, shape index: {1}]   ;;  %s264_s5 = inlined_call_operand.vmem [shape: f32[4,1], index: 5, kind: output, shape index: {2}]   ;;  %s265_s6 = inlined_call_operand.vmem [shape: f32[4,1], index: 6, kind: output, shape index: {3}]  }
   0x1   :  { %s17_s23 = sshll.u32 %s259_s0, 4  ;;  %s19_s25 = sshll.u32 %s179_s24, 4  ;;  %s18_s23 = int_to_ptr.hbm [resolvable:$true] %s17_s23  ;;  %s20_s25 = int_to_ptr.vmem [resolvable:$true] %s19_s25 }
   0x2   :  { %s181_s27 = smov 8  }
   0x3   :  { %25 = dma.hbm_to_vmem [thread:$0]  %s18_s23, 256, %s20_s25, [#allocation5], %s180_s26, %s180_s26, %s181_s27  }
   0x4   :  { %177 = dma.done.wait [#allocation5], 256  }
   0x5   :  { %178 = vsyncadd [#allocation5], 4294967040  ;;  %vm38_vm0 = vcmask 3072   ;;  %v182_v0 = vmov 0.0   ;;  %v41_v1 = vld [vmem:[#allocation4] sm:$0xff]  ;;  %v42_v2 = vld [vmem:[#allocation4 + $0x8] sm:$0xff] }
   0x6   :  { %39 = vst.msk [vmem:[#allocation2] sm:$0xf] %vm38_vm0, %v182_v0  ;;  %v63_v3 = vmul.f32 %v41_v1, %v41_v1  ;;  %vm56_vm1 = vcmask 1043456   ;;  %v64_v4 = vmul.f32 %v42_v2, %v42_v2  ;;  %v121_v49 = vld [vmem:[%s260_s1] sm:$0xf] }
   0x7   :  { %40 = vst.msk [vmem:[#allocation3] sm:$0xf] %vm38_vm0, %v182_v0  ;;  %v122_v53 = vld [vmem:[%s261_s2] sm:$0xf] }
   0x8   :  { %45 = vst [vmem:[#allocation1] ss:$2 sm:$0xff] %v41_v1 }
   0x9   :  { %49 = vst [vmem:[#allocation1 + $0x10] ss:$2 sm:$0xff] %v42_v2 }
   0xd   :  { %v84_v31 = vld [vmem:[#allocation2] sm:$0xf] }
   0xe   :  { %v93_v34 = vld [vmem:[#allocation3] sm:$0xf] }
   0xf   :  { %v46_v5 = vld.sshfl [vmem:[#allocation1] sm:$0xff pattern:$0x75316420]  ;;  %v47_v6 = vld.sshfl [vmem:[#allocation1 + $0x8] sm:$0xff pattern:$0x75316420] }
  0x10   :  { %v50_v7 = vld.sshfl [vmem:[#allocation1 + $0x10] sm:$0xff pattern:$0x75316420]  ;;  %v51_v8 = vld.sshfl [vmem:[#allocation1 + $0x18] sm:$0xff pattern:$0x75316420] }
  0x11   :  { %v57_v9 = vsel %vm56_vm1, %v46_v5, 0.0  ;;  %v58_v10 = vsel %vm56_vm1, %v50_v7, 0.0  ;;  %v60_v11 = vsel %vm56_vm1, %v47_v6, 0.0  ;;  %v61_v12 = vsel %vm56_vm1, %v51_v8, 0.0  ;;  %67 = vst [vmem:[#allocation1] ss:$2 sm:$0xff] %v63_v3 }
  0x12   :  { %v59_v13 = vadd.f32 %v58_v10, %v57_v9  ;;  %v62_v14 = vadd.f32 %v61_v12, %v60_v11  ;;  %71 = vst [vmem:[#allocation1 + $0x10] ss:$2 sm:$0xff] %v64_v4 }
  0x14   :  { %v85_v15 = vsel %vm56_vm1, %v59_v13, 0.0  ;;  %v86_v16 = vsel %vm56_vm1, %v62_v14, 0.0 }
  0x15   :  { %v87_v17 = vadd.f32 %v86_v16, %v85_v15 }
  0x17   :  { %88 = vadd.xlane.f32.xlu0 %v87_v17 }
  0x18   :  { %v68_v18 = vld.sshfl [vmem:[#allocation1] sm:$0xff pattern:$0x75316420]  ;;  %v69_v19 = vld.sshfl [vmem:[#allocation1 + $0x8] sm:$0xff pattern:$0x75316420] }
  0x19   :  { %v72_v20 = vld.sshfl [vmem:[#allocation1 + $0x10] sm:$0xff pattern:$0x75316420]  ;;  %v73_v21 = vld.sshfl [vmem:[#allocation1 + $0x18] sm:$0xff pattern:$0x75316420] }
  0x1a   :  { %v78_v22 = vsel %vm56_vm1, %v68_v18, 0.0  ;;  %v79_v23 = vsel %vm56_vm1, %v72_v20, 0.0  ;;  %v81_v24 = vsel %vm56_vm1, %v69_v19, 0.0  ;;  %v82_v25 = vsel %vm56_vm1, %v73_v21, 0.0 }
  0x1b   :  { %v80_v26 = vadd.f32 %v79_v23, %v78_v22  ;;  %v83_v27 = vadd.f32 %v82_v25, %v81_v24 }
  0x1d   :  { %v94_v28 = vsel %vm56_vm1, %v80_v26, 0.0  ;;  %v95_v29 = vsel %vm56_vm1, %v83_v27, 0.0 }
  0x1e   :  { %v96_v30 = vadd.f32 %v95_v29, %v94_v28 }
  0x20   :  { %97 = vadd.xlane.f32.xlu0 %v96_v30 }
  0x8a   :  { %v89_v32 = vpop.xlane.xlu0 %88 }
  0x8b   :  { %v90_v33 = vadd.f32 %v89_v32, %v84_v31 }
  0x8d   :  { %92 = vst.msk [vmem:[#allocation2] sm:$0xf] %vm38_vm0, %v90_v33 }
  0x93   :  { %v98_v35 = vpop.xlane.xlu0 %97 }
  0x94   :  { %v104_v36 = vld [vmem:[#allocation2] sm:$0xf]  ;;  %v99_v37 = vadd.f32 %v98_v35, %v93_v34 }
  0x95   :  { %v105_v38 = vmul.f32 0.001953125, %v104_v36 }
  0x96   :  { %100 = vst.msk [vmem:[#allocation3] sm:$0xf] %vm38_vm0, %v99_v37 }
  0x97   :  { %124 = vst.msk [vmem:[%s264_s5] sm:$0xf] %vm38_vm0, %v105_v38  ;;  %v108_v41 = vmul.f32 %v105_v38, %v105_v38 }
  0x9d   :  { %v106_v39 = vld [vmem:[#allocation3] sm:$0xf] }
  0x9e   :  { %v107_v40 = vmul.f32 0.001953125, %v106_v39 }
  0xa0   :  { %v109_v42 = vsub.f32 %v107_v40, %v108_v41 }
  0xa2   :  { %v110_v43 = vadd.f32 1e-05, %v109_v42  ;;  %125 = vst.msk [vmem:[%s265_s6] sm:$0xf] %vm38_vm0, %v109_v42 }
  0xa4   :  { %151 = vrsqrt.f32 %v110_v43  ;;  %vm117_vm3 = vweird.f32 %v110_v43 }
  0xaa   :  { %v152_v44 = vpop.eup %151 }
  0xab   :  { %v112_v45 = vmul.f32 %v152_v44, %v110_v43  ;;  %vm118_vm2 = vweird.f32 %v152_v44 }
  0xac   :  { %vm119_vm4 = vmor %vm117_vm3, %vm118_vm2 }
  0xad   :  { %v113_v46 = vmul.f32 %v152_v44, %v112_v45 }
  0xaf   :  { %v114_v47 = vmul.f32 0.5, %v113_v46 }
  0xb1   :  { %v115_v48 = vsub.f32 1.5, %v114_v47 }
  0xb3   :  { %v116_v50 = vmul.f32 %v152_v44, %v115_v48 }
  0xb5   :  { %v120_v51 = vsel %vm119_vm4, %v152_v44, %v116_v50 }
  0xb6   :  { %v123_v52 = vmul.f32 %v121_v49, %v120_v51 }
  0xb8   :  { %126 = vst.msk [vmem:[%s262_s3] sm:$0xf] %vm38_vm0, %v123_v52  ;;  %v127_v54 = vmul.f32 %v123_v52, %v105_v38 }
  0xba   :  { %v128_v55 = vsub.f32 %v122_v53, %v127_v54 }
  0xbc   :  { %129 = vst.msk [vmem:[%s263_s4] sm:$0xf] %vm38_vm0, %v128_v55 }
  0xbd   :  { %146 = vsyncpa [#allocation5], 1 }

</bundles_post_ra>
